<compile_context>
chip_gen: v5e
topology: v5e:2x2
jax: 0.10.0
libtpu: 0.0.40
codegen_flags: <defaults>
</compile_context>

<pallas_src>
import math
import functools

import jax
import jax.numpy as jnp
from jax.experimental import pallas as pl
from jax.experimental.pallas import tpu as pltpu


def _round_up(x: int, m: int) -> int:
    return ((x + m - 1) // m) * m


def _cdiv(a: int, b: int) -> int:
    return (a + b - 1) // b


def _sublane_min(dtype) -> int:
    """Minimum second-to-last-dim tile for a dtype: 8 (f32), 16 (bf16), 32 (8-bit)."""
    itemsize = jnp.dtype(dtype).itemsize
    if itemsize >= 4:
        return 8
    if itemsize == 2:
        return 16
    return 32


def _balanced_tile(dim: int, cap: int, align: int):
    """Largest tile <= cap (align-rounded) that keeps padding of `dim` minimal.

    Returns (tile, padded_dim) with padded_dim == tile * num_blocks >= dim.
    """
    cap = max(cap, align)
    padded = _round_up(dim, align)
    n_blocks = _cdiv(padded, cap)
    tile = _round_up(_cdiv(padded, n_blocks), align)
    return tile, tile * n_blocks


def _make_kernel(scale: float, direct_accumulate: bool):
    """out = (x @ W_t) * scale + b, tiled over (i, j, k), f32 accumulation."""

    if direct_accumulate:
        # Output dtype is f32: accumulate straight into the resident output
        # block (saves the tm*tn f32 scratch and the finalize copy pass).
        def kernel(x_ref, wt_ref, b_ref, o_ref):
            k = pl.program_id(2)

            @pl.when(k == 0)
            def _():
                o_ref[...] = jnp.zeros_like(o_ref)

            # (tm, tk) @ (tk, tn) — standard MXU form, no weight transpose here.
            o_ref[...] += jnp.dot(
                x_ref[...], wt_ref[...], preferred_element_type=jnp.float32
            )

            @pl.when(k == pl.num_programs(2) - 1)
            def _():
                # Fold equalized-LR scale + bias into the finalize pass.
                o_ref[...] = o_ref[...] * scale + b_ref[...]

    else:
        # Narrow output dtype: keep an f32 VMEM accumulator and cast once.
        def kernel(x_ref, wt_ref, b_ref, o_ref, acc_ref):
            k = pl.program_id(2)

            @pl.when(k == 0)
            def _():
                acc_ref[...] = jnp.zeros_like(acc_ref)

            acc_ref[...] += jnp.dot(
                x_ref[...], wt_ref[...], preferred_element_type=jnp.float32
            )

            @pl.when(k == pl.num_programs(2) - 1)
            def _():
                o_ref[...] = (acc_ref[...] * scale + b_ref[...]).astype(o_ref.dtype)

    return kernel


@functools.partial(
    jax.jit, static_argnames=("tm_cap", "tn_cap", "tk_cap", "compute_dtype")
)
def equal_lr_linear(
    x, weight_orig, bias, *, tm_cap=512, tn_cap=512, tk_cap=1024, compute_dtype=None
):
    """x: (M, in_dim), weight_orig: (out_dim, in_dim), bias: (out_dim,).

    compute_dtype: optional operand dtype (e.g. jnp.bfloat16) to halve HBM
    traffic / unlock the bf16 MXU rate; accumulation and epilogue stay f32.
    """
    M, K = x.shape
    N, K2 = weight_orig.shape
    assert K == K2, "in_dim mismatch"
    assert bias.shape == (N,)
    scale = math.sqrt(2.0 / K)  # fan_in = in_dim for nn.Linear

    out_dtype = x.dtype
    op_dtype = jnp.dtype(compute_dtype) if compute_dtype is not None else jnp.dtype(x.dtype)
    sub = _sublane_min(op_dtype)

    # Tile selection: minimize padding while staying (sublane, 128)-aligned.
    tm, Mp = _balanced_tile(M, tm_cap, sub)
    tn, Np = _balanced_tile(N, tn_cap, 128)
    tk, Kp = _balanced_tile(K, tk_cap, 128)

    # Pre-transpose W to (K, N) ONCE — the kernel then contracts x's last dim
    # against W_t's first dim (standard MXU form, no in-loop XLU transpose).
    wt = jnp.transpose(weight_orig)  # (K, N)

    # Zero-pad only where needed (zeros along K keep the accumulation exact;
    # padded M/N rows/cols are sliced off below).  No-op for aligned shapes.
    x_p = x if (Mp == M and Kp == K) else jnp.pad(x, ((0, Mp - M), (0, Kp - K)))
    wt_p = wt if (Kp == K and Np == N) else jnp.pad(wt, ((0, Kp - K), (0, Np - N)))
    b_p = (bias if Np == N else jnp.pad(bias, (0, Np - N)))
    b_p = b_p.reshape(1, Np).astype(jnp.float32)

    if compute_dtype is not None:
        x_p = x_p.astype(op_dtype)
        wt_p = wt_p.astype(op_dtype)

    direct = jnp.dtype(out_dtype) == jnp.dtype(jnp.float32)

    grid = (Mp // tm, Np // tn, Kp // tk)

    # VMEM budget: double-buffered x/W/bias/out tiles (+ scratch) + headroom.
    op_size = op_dtype.itemsize
    out_size = jnp.dtype(out_dtype).itemsize
    working_set = (
        2 * (tm * tk * op_size + tk * tn * op_size + tn * 4)
        + 2 * tm * tn * out_size
        + (0 if direct else tm * tn * 4)
    )
    vmem_limit = min(int(working_set * 1.5) + (2 << 20), 64 * 1024 * 1024)

    bytes_accessed = (
        x_p.size * x_p.dtype.itemsize
        + wt_p.size * wt_p.dtype.itemsize
        + b_p.size * b_p.dtype.itemsize
        + Mp * Np * out_size
    )
    cost = pl.CostEstimate(
        flops=2 * Mp * Np * Kp, transcendentals=0, bytes_accessed=bytes_accessed
    )

    scratch_shapes = [] if direct else [pltpu.VMEM((tm, tn), jnp.float32)]

    out_p = pl.pallas_call(
        _make_kernel(scale, direct),
        out_shape=jax.ShapeDtypeStruct((Mp, Np), out_dtype),
        grid_spec=pltpu.PrefetchScalarGridSpec(
            num_scalar_prefetch=0,
            grid=grid,
            in_specs=[
                pl.BlockSpec((tm, tk), lambda i, j, k: (i, k)),  # x
                pl.BlockSpec((tk, tn), lambda i, j, k: (k, j)),  # W^T (in, out)
                pl.BlockSpec((1, tn), lambda i, j, k: (0, j)),   # bias
            ],
            out_specs=pl.BlockSpec((tm, tn), lambda i, j, k: (i, j)),
            scratch_shapes=scratch_shapes,
        ),
        compiler_params=pltpu.CompilerParams(
            dimension_semantics=("parallel", "parallel", "arbitrary"),
            vmem_limit_bytes=vmem_limit,
        ),
        cost_estimate=cost,
    )(x_p, wt_p, b_p)

    if Mp == M and Np == N:
        return out_p
    return out_p[:M, :N]


if __name__ == "__main__":
    # Small shapes consistent with the module's forward: (batch, in_dim).
    batch, in_dim, out_dim = 8, 32, 64

    key = jax.random.PRNGKey(0)
    kx, kw = jax.random.split(key)

    x = jax.random.normal(kx, (batch, in_dim), dtype=jnp.float32)
    # Parameter init matching __init__: weight_orig ~ N(0,1), bias = 0.
    weight_orig = jax.random.normal(kw, (out_dim, in_dim), dtype=jnp.float32)
    bias = jnp.zeros((out_dim,), dtype=jnp.float32)

    out = equal_lr_linear(x, weight_orig, bias)
    jax.block_until_ready(out)

    # Reference check in plain JAX.
    scale = math.sqrt(2.0 / in_dim)
    ref = x @ (weight_orig * scale).T + bias
    assert out.shape == (batch, out_dim)
    assert jnp.allclose(out, ref, atol=1e-5, rtol=1e-5), float(
        jnp.max(jnp.abs(out - ref))
    )

    # Larger sanity check exercising a multi-block (i, j, k) grid
    # (M=640 -> tm=320 x2, N=768 -> tn=384 x2, K=2048 -> tk=1024 x2; no padding).
    M2, K2, N2 = 640, 2048, 768
    k1, k2 = jax.random.split(jax.random.PRNGKey(1))
    x2 = jax.random.normal(k1, (M2, K2), dtype=jnp.float32)
    w2 = jax.random.normal(k2, (N2, K2), dtype=jnp.float32)
    b2 = jnp.zeros((N2,), dtype=jnp.float32)
    out2 = equal_lr_linear(x2, w2, b2)
    jax.block_until_ready(out2)
    ref2 = x2 @ (w2 * math.sqrt(2.0 / K2)).T + b2
    assert jnp.allclose(out2, ref2, atol=2e-3, rtol=2e-3), float(
        jnp.max(jnp.abs(out2 - ref2))
    )

    print("KERNEL_OK")
</pallas_src>

<mosaic_0001>
module attributes {stable_mosaic.version = 11 : i64} {
  func.func @kernel(%arg0: i32, %arg1: i32, %arg2: i32, %arg3: memref<8x128xf32, #tpu.memory_space<vmem>>, %arg4: memref<128x128xf32, #tpu.memory_space<vmem>>, %arg5: memref<1x128xf32, #tpu.memory_space<vmem>>, %arg6: memref<8x128xf32, #tpu.memory_space<vmem>>) attributes {dimension_semantics = [#tpu.dimension_semantics<parallel>, #tpu.dimension_semantics<parallel>, #tpu.dimension_semantics<arbitrary>], iteration_bounds = array<i64: 1, 1, 1>, scalar_prefetch = 0 : i64, scratch_operands = 0 : i64, tpu.core_type = #tpu.core_type<tc>, window_params = [{transform_indices = @transform_0, window_bounds = array<i64: 8, 128>}, {transform_indices = @transform_1, window_bounds = array<i64: 128, 128>}, {transform_indices = @transform_2, window_bounds = array<i64: 1, 128>}, {transform_indices = @transform_3, window_bounds = array<i64: 8, 128>}]} {
    %c0_i32 = arith.constant 0 : i32
    %0 = arith.cmpi eq, %arg2, %c0_i32 : i32
    %1 = arith.extui %0 : i1 to i32
    %c0_i32_0 = arith.constant 0 : i32
    %2 = arith.cmpi ne, %1, %c0_i32_0 : i32
    scf.if %2 {
      %cst_10 = arith.constant 0.000000e+00 : f32
      %12 = vector.broadcast %cst_10 : f32 to vector<8x128xf32>
      %c0_11 = arith.constant 0 : index
      %c0_12 = arith.constant 0 : index
      %13 = vector.load %arg6[%c0_11, %c0_12] : memref<8x128xf32, #tpu.memory_space<vmem>>, vector<8x128xf32>
      tpu.vector_store %arg6[%c0_11, %c0_12], %12 {strides = array<i32>} : memref<8x128xf32, #tpu.memory_space<vmem>>, vector<8x128xf32>,
    } else {
    }
    %c0 = arith.constant 0 : index
    %c0_1 = arith.constant 0 : index
    %3 = vector.load %arg6[%c0, %c0_1] : memref<8x128xf32, #tpu.memory_space<vmem>>, vector<8x128xf32>
    %c0_2 = arith.constant 0 : index
    %c0_3 = arith.constant 0 : index
    %4 = vector.load %arg3[%c0_2, %c0_3] : memref<8x128xf32, #tpu.memory_space<vmem>>, vector<8x128xf32>
    %c0_4 = arith.constant 0 : index
    %c0_5 = arith.constant 0 : index
    %5 = vector.load %arg4[%c0_4, %c0_5] : memref<128x128xf32, #tpu.memory_space<vmem>>, vector<128x128xf32>
    %cst = arith.constant dense<0.000000e+00> : vector<8x128xf32>
    %6 = tpu.matmul %4, %5, %cst {dimension_numbers = #tpu.dot_dimension_numbers<[1], [0], [0], [1], [0, 0, 1, 1], [], []>} : vector<8x128xf32>, vector<128x128xf32>, vector<8x128xf32> -> vector<8x128xf32>
    %7 = arith.addf %3, %6 : vector<8x128xf32>
    %c0_6 = arith.constant 0 : index
    %c0_7 = arith.constant 0 : index
    %8 = vector.load %arg6[%c0_6, %c0_7] : memref<8x128xf32, #tpu.memory_space<vmem>>, vector<8x128xf32>
    tpu.vector_store %arg6[%c0_6, %c0_7], %7 {strides = array<i32>} : memref<8x128xf32, #tpu.memory_space<vmem>>, vector<8x128xf32>,
    %c0_i32_8 = arith.constant 0 : i32
    %9 = arith.cmpi eq, %arg2, %c0_i32_8 : i32
    %10 = arith.extui %9 : i1 to i32
    %c0_i32_9 = arith.constant 0 : i32
    %11 = arith.cmpi ne, %10, %c0_i32_9 : i32
    scf.if %11 {
      %c0_10 = arith.constant 0 : index
      %c0_11 = arith.constant 0 : index
      %12 = vector.load %arg6[%c0_10, %c0_11] : memref<8x128xf32, #tpu.memory_space<vmem>>, vector<8x128xf32>
      %cst_12 = arith.constant 2.500000e-01 : f32
      %13 = vector.broadcast %cst_12 : f32 to vector<8x128xf32>
      %14 = arith.mulf %12, %13 : vector<8x128xf32>
      %c0_13 = arith.constant 0 : index
      %c0_14 = arith.constant 0 : index
      %15 = vector.load %arg5[%c0_13, %c0_14] : memref<1x128xf32, #tpu.memory_space<vmem>>, vector<1x128xf32>
      %16 = vector.broadcast %15 : vector<1x128xf32> to vector<8x128xf32>
      %17 = arith.addf %14, %16 : vector<8x128xf32>
      %c0_15 = arith.constant 0 : index
      %c0_16 = arith.constant 0 : index
      %18 = vector.load %arg6[%c0_15, %c0_16] : memref<8x128xf32, #tpu.memory_space<vmem>>, vector<8x128xf32>
      tpu.vector_store %arg6[%c0_15, %c0_16], %17 {strides = array<i32>} : memref<8x128xf32, #tpu.memory_space<vmem>>, vector<8x128xf32>,
    } else {
    }
    return
  }
  func.func @transform_0(%arg0: i32, %arg1: i32, %arg2: i32) -> (i32, i32) {
    %c0_i32 = arith.constant 0 : i32
    return %arg0, %arg2 : i32, i32
  }
  func.func @transform_1(%arg0: i32, %arg1: i32, %arg2: i32) -> (i32, i32) {
    %c0_i32 = arith.constant 0 : i32
    return %arg2, %arg1 : i32, i32
  }
  func.func @transform_2(%arg0: i32, %arg1: i32, %arg2: i32) -> (i32, i32) {
    %c0_i32 = arith.constant 0 : i32
    %c0_i32_0 = arith.constant 0 : i32
    return %c0_i32, %arg1 : i32, i32
  }
  func.func @transform_3(%arg0: i32, %arg1: i32, %arg2: i32) -> (i32, i32) {
    %c0_i32 = arith.constant 0 : i32
    return %arg0, %arg1 : i32, i32
  }
}

</mosaic_0001>

<bundles_post_ra>
// kernel: equal_lr_linear.1
= control target key start
LH: loop header
LB: loop body
LE: loop exit
PB: predicated region body
PF: predicated region fallthrough
CT: control target
= control target key end

     0   :  { %s194_s0 = inlined_call_operand.vmem [shape: f32[8,128], index: 0, kind: input, shape index: {}]   ;;  %s195_s1 = inlined_call_operand.vmem [shape: f32[128,128], index: 1, kind: input, shape index: {}]   ;;  %s196_s2 = inlined_call_operand.vmem [shape: f32[1,128], index: 2, kind: input, shape index: {}]   ;;  %s197_s3 = inlined_call_operand.hbm [shape: f32[8,128], index: 3, kind: output, shape index: {}]  }
   0x1   :  { %v37_v0 = vld [vmem:[%s195_s1 + $0x78] sm:$0xff]  ;;  %v36_v1 = vld [vmem:[%s195_s1 + $0x70] sm:$0xff]  ;;  %v35_v2 = vld [vmem:[%s195_s1 + $0x68] sm:$0xff] }
   0x2   :  { %38 = vmatpush.msra.mxu0 %v37_v0  ;;  %v34_v3 = vld [vmem:[%s195_s1 + $0x60] sm:$0xff] }
   0x4   :  { %39 = vmatpush.msra.mxu0 %v36_v1 }
   0x6   :  { %40 = vmatpush.msra.mxu0 %v35_v2 }
   0x7   :  { %8 = vsyncpa [#allocation3], 0  ;;  %v33_v4 = vld [vmem:[%s195_s1 + $0x58] sm:$0xff]  ;;  %v32_v5 = vld [vmem:[%s195_s1 + $0x50] sm:$0xff]  ;;  %s116_s21 = smov [#allocation2]   ;;  %s78_s25 = sshll.u32 %s197_s3, 4  ;;  %s79_s25 = int_to_ptr.hbm [resolvable:$true] %s78_s25 }
   0x8   :  { %41 = vmatpush.msra.mxu0 %v34_v3  ;;  %v31_v6 = vld [vmem:[%s195_s1 + $0x48] sm:$0xff]  ;;  %v30_v7 = vld [vmem:[%s195_s1 + $0x40] sm:$0xff]  ;;  %v29_v8 = vld [vmem:[%s195_s1 + $0x38] sm:$0xff]  ;;  %s76_s22 = sshll.u32 %s116_s21, 4  ;;  %s77_s22 = int_to_ptr.vmem [resolvable:$true] %s76_s22 }
   0x9   :  { %v28_v9 = vld [vmem:[%s195_s1 + $0x30] sm:$0xff]  ;;  %v27_v10 = vld [vmem:[%s195_s1 + $0x28] sm:$0xff]  ;;  %v26_v11 = vld [vmem:[%s195_s1 + $0x20] sm:$0xff] }
   0xa   :  { %42 = vmatpush.msra.mxu0 %v33_v4  ;;  %v25_v12 = vld [vmem:[%s195_s1 + $0x18] sm:$0xff]  ;;  %v24_v13 = vld [vmem:[%s195_s1 + $0x10] sm:$0xff]  ;;  %v23_v14 = vld [vmem:[%s195_s1 + $0x8] sm:$0xff] }
   0xb   :  { %v22_v15 = vld [vmem:[%s195_s1] sm:$0xff] }
   0xc   :  { %43 = vmatpush.msra.mxu0 %v32_v5  ;;  %v21_v16 = vld [vmem:[%s194_s0] sm:$0xff] }
   0xd   :  { %v89_v18 = vld [vmem:[%s196_s2] ss:$0 sm:$0xff] }
   0xe   :  { %44 = vmatpush.msra.mxu0 %v31_v6 }
  0x10   :  { %45 = vmatpush.msra.mxu0 %v30_v7 }
  0x12   :  { %46 = vmatpush.msra.mxu0 %v29_v8 }
  0x14   :  { %47 = vmatpush.msra.mxu0 %v28_v9 }
  0x16   :  { %48 = vmatpush.msra.mxu0 %v27_v10 }
  0x18   :  { %49 = vmatpush.msra.mxu0 %v26_v11 }
  0x1a   :  { %50 = vmatpush.msra.mxu0 %v25_v12 }
  0x1c   :  { %51 = vmatpush.msra.mxu0 %v24_v13 }
  0x1e   :  { %52 = vmatpush.msra.mxu0 %v23_v14 }
  0x20   :  { %53 = vmatpush.msra.mxu0 %v22_v15 }
  0x21   :  { %54 = vmatmul.f32.vlgmr.msra.gmra.mxu0 %v21_v16 }
  0x9e   :  { %v55_v17 = vpop.f32.mrf.mxu0 }
  0x9f   :  { %v64_v19 = vmul.f32 0.25, %v55_v17 }
  0xa1   :  { %v69_v20 = vadd.f32 %v89_v18, %v64_v19 }
  0xa3   :  { %70 = vst [vmem:[#allocation2] sm:$0xff] %v69_v20 }
  0xa4   :  { %81 = dma.vmem_to_hbm [thread:$0]  %s77_s22, 128, %s79_s25, [#allocation3]  }
  0xa5   :  { %114 = dma.done.wait [#allocation3], 128  }
  0xa6   :  { %115 = vsyncadd [#allocation3], 4294967168 }
  0xa7   :  { %86 = vsyncpa [#allocation3], 1 }

</bundles_post_ra>
